<compile_context>
chip_gen: v7x
topology: tpu7x:2x2x1
jax: 0.10.0
libtpu: 0.0.40
codegen_flags: <defaults>
</compile_context>

<pallas_src>
import functools

import jax
import jax.numpy as jnp
from jax.experimental import pallas as pl
from jax.experimental.pallas import tpu as pltpu


# OGB full_atom_feature_dims (get_atom_feature_dims())
FULL_ATOM_FEATURE_DIMS = [119, 4, 12, 12, 10, 6, 6, 2, 2]
NUM_FEATURES = len(FULL_ATOM_FEATURE_DIMS)


def _round_up(x, m):
    return (x + m - 1) // m * m


def _num_tensorcores_per_chip():
    """2 on v7x (grid axis gets sharded across TCs), else 1. Safe fallback 1."""
    try:
        kind = jax.devices()[0].device_kind.lower()
    except Exception:
        return 1
    return 2 if ("v7" in kind or "7x" in kind) else 1


def atom_encoder_kernel(x_ref, hi_ref, lo_ref, out_ref, *, offsets, sizes, v_pad):
    """One node-tile of the AtomEncoder forward.

    x_ref  : [TN, F] int32     raw (un-offset) atom feature indices
    hi_ref : [V, E]  bfloat16  table rounded to bf16
    lo_ref : [V, E]  bfloat16  residual (table_f32 - hi) in bf16
    out_ref: [TN, E] float32
    """
    x = x_ref[...]                                   # [TN, F] int32
    tn = x.shape[0]

    # Disjoint-range multi-hot, built per 128-lane half so each feature only
    # does compares on the lanes its static range [off, off+size) intersects.
    halves = []
    for h in range(v_pad // 128):
        lane_lo, lane_hi = h * 128, (h + 1) * 128
        iota = jax.lax.broadcasted_iota(jnp.int32, (tn, 128), 1) + lane_lo
        acc = None
        for i, (off, sz) in enumerate(zip(offsets, sizes)):
            if off + sz <= lane_lo or off >= lane_hi:
                continue                              # feature never lands here
            eq = iota == (x[:, i:i + 1] + off)        # offset is a constant
            acc = eq if acc is None else jnp.logical_or(acc, eq)
        if acc is None:
            halves.append(jnp.zeros((tn, 128), dtype=jnp.bfloat16))
        else:
            halves.append(acc.astype(jnp.bfloat16))
    mh = jnp.concatenate(halves, axis=1)              # [TN, V_pad] bf16 (exact 0/1)

    # sum_i table[x[n,i] + off_i] == mh @ table.  bf16 hi/lo split: two native
    # bf16 MXU matmuls with f32 accumulation recover ~f32 accuracy.
    out = jnp.dot(mh, hi_ref[...], preferred_element_type=jnp.float32)
    out = out + jnp.dot(mh, lo_ref[...], preferred_element_type=jnp.float32)
    out_ref[...] = out


def atom_encoder_forward(x, tables, emb_dim, *, tile_n=1024):
    """x: [N, F] int indices, tables: list of [dim_i + 1, emb_dim] f32 arrays."""
    n, f = x.shape
    assert f == len(tables)

    # Static per-feature row offsets into the concatenated table (pure Python).
    sizes = [int(t.shape[0]) for t in tables]
    offsets = [0] * f
    for i in range(1, f):
        offsets[i] = offsets[i - 1] + sizes[i - 1]
    v_total = offsets[-1] + sizes[-1]
    v_pad = _round_up(v_total, 128)                   # lane-aligned contraction dim

    # Concatenated, zero-padded table -> bf16 hi/lo pair (one-time param prep).
    big = jnp.concatenate(tables, axis=0).astype(jnp.float32)
    big = jnp.pad(big, ((0, v_pad - v_total), (0, 0)))
    t_hi = big.astype(jnp.bfloat16)
    t_lo = (big - t_hi.astype(jnp.float32)).astype(jnp.bfloat16)

    # Node tile selection:
    #  - if the whole problem fits one tile, use block == full array dim
    #    (always legal, no padding, no tail slice) unless we are on a
    #    2-TensorCore chip (v7x) where >=2 grid steps lets both TCs work.
    #  - otherwise use the (large) requested tile; padded tail rows get
    #    index 0 (valid) and are sliced off only when padding was needed.
    num_cores = _num_tensorcores_per_chip()
    tile_n = max(8, (int(tile_n) // 8) * 8)
    if n <= tile_n:
        if num_cores >= 2 and n > 8:
            tile = _round_up(pl.cdiv(n, 2), 8)        # half per TensorCore
        else:
            tile = n                                  # single full-array block
    else:
        tile = tile_n
    n_pad = _round_up(n, tile)

    x = x.astype(jnp.int32)
    if n_pad != n:
        x = jnp.pad(x, ((0, n_pad - n), (0, 0)))      # padded rows -> index 0

    kernel = functools.partial(
        atom_encoder_kernel,
        offsets=tuple(offsets), sizes=tuple(sizes), v_pad=v_pad)

    cost = pl.CostEstimate(
        flops=2 * (2 * n_pad * v_pad * emb_dim),      # two bf16 matmuls
        transcendentals=0,
        bytes_accessed=(n_pad * f * 4                 # indices
                        + n_pad * emb_dim * 4         # output
                        + 2 * v_pad * emb_dim * 2),   # hi + lo tables (bf16)
    )

    out = pl.pallas_call(
        kernel,
        out_shape=jax.ShapeDtypeStruct((n_pad, emb_dim), jnp.float32),
        grid_spec=pltpu.PrefetchScalarGridSpec(
            num_scalar_prefetch=0,
            grid=(n_pad // tile,),
            in_specs=[
                pl.BlockSpec((tile, f), lambda i: (i, 0)),          # index tile
                pl.BlockSpec((v_pad, emb_dim), lambda i: (0, 0)),   # hi table
                pl.BlockSpec((v_pad, emb_dim), lambda i: (0, 0)),   # lo table
            ],
            out_specs=pl.BlockSpec((tile, emb_dim), lambda i: (i, 0)),
        ),
        compiler_params=pltpu.CompilerParams(
            dimension_semantics=("parallel",)),
        cost_estimate=cost,
    )(x, t_hi, t_lo)

    return out if n_pad == n else out[:n]


def init_embedding_tables(key, emb_dim):
    """Xavier-uniform init, matching torch.nn.init.xavier_uniform_ shapes."""
    tables = []
    for dim in FULL_ATOM_FEATURE_DIMS:
        num_emb = dim + 1
        key, sub = jax.random.split(key)
        bound = (6.0 / (num_emb + emb_dim)) ** 0.5
        tables.append(
            jax.random.uniform(sub, (num_emb, emb_dim),
                               minval=-bound, maxval=bound,
                               dtype=jnp.float32))
    return tables


def reference_forward(x, tables):
    out = 0
    for i, t in enumerate(tables):
        out = out + t[x[:, i]]
    return out


if __name__ == "__main__":
    emb_dim = 128
    n_nodes = 64

    key = jax.random.PRNGKey(0)
    key, k_tab, k_x = jax.random.split(key, 3)

    tables = init_embedding_tables(k_tab, emb_dim)

    # Random valid atom feature indices per feature column.
    cols = []
    for dim in FULL_ATOM_FEATURE_DIMS:
        k_x, sub = jax.random.split(k_x)
        cols.append(jax.random.randint(sub, (n_nodes, 1), 0, dim + 1,
                                       dtype=jnp.int32))
    x = jnp.concatenate(cols, axis=1)                 # [N, F] int32

    out = atom_encoder_forward(x, tables, emb_dim)
    out = jax.block_until_ready(out)

    ref = reference_forward(x, tables)
    assert out.shape == (n_nodes, emb_dim)
    # bf16 hi/lo table split bounds per-element error by ~9 * half-ulp(lo)
    # (< ~1e-5 worst case, typically ~1e-6); use 2e-5 for a robust check.
    err = float(jnp.max(jnp.abs(out - ref)))
    assert err < 2e-5, f"mismatch vs reference: max abs err {err}"

    print("KERNEL_OK")
</pallas_src>

<mosaic_0001>
module attributes {stable_mosaic.version = 11 : i64} {
  func.func @atom_encoder_kernel(%arg0: i32, %arg1: memref<64x9xi32, #tpu.memory_space<vmem>>, %arg2: memref<256x128xbf16, #tpu.memory_space<vmem>>, %arg3: memref<256x128xbf16, #tpu.memory_space<vmem>>, %arg4: memref<64x128xf32, #tpu.memory_space<vmem>>) attributes {dimension_semantics = [#tpu.dimension_semantics<parallel>], iteration_bounds = array<i64: 1>, scalar_prefetch = 0 : i64, scratch_operands = 0 : i64, tpu.core_type = #tpu.core_type<tc>, window_params = [{transform_indices = @transform_0, window_bounds = array<i64: 64, 9>}, {pipeline_mode = #tpu.pipeline_mode<synchronous>, transform_indices = @transform_1, window_bounds = array<i64: 256, 128>}, {pipeline_mode = #tpu.pipeline_mode<synchronous>, transform_indices = @transform_2, window_bounds = array<i64: 256, 128>}, {transform_indices = @transform_3, window_bounds = array<i64: 64, 128>}]} {
    %c0 = arith.constant 0 : index
    %c0_0 = arith.constant 0 : index
    %0 = vector.load %arg1[%c0, %c0_0] : memref<64x9xi32, #tpu.memory_space<vmem>>, vector<64x9xi32>
    %1 = tpu.iota {dimensions = array<i32: 1>} : vector<64x128xi32>
    %c0_i32 = arith.constant 0 : i32
    %2 = vector.broadcast %c0_i32 : i32 to vector<64x128xi32>
    %3 = arith.addi %1, %2 : vector<64x128xi32>
    %4 = vector.extract_strided_slice %0 {offsets = [0, 0], sizes = [64, 1], strides = [1, 1]} : vector<64x9xi32> to vector<64x1xi32>
    %c0_i32_1 = arith.constant 0 : i32
    %5 = vector.broadcast %c0_i32_1 : i32 to vector<64x1xi32>
    %6 = arith.addi %4, %5 : vector<64x1xi32>
    %7 = vector.broadcast %6 : vector<64x1xi32> to vector<64x128xi32>
    %8 = arith.cmpi eq, %3, %7 : vector<64x128xi32>
    %9 = vector.extract_strided_slice %0 {offsets = [0, 1], sizes = [64, 1], strides = [1, 1]} : vector<64x9xi32> to vector<64x1xi32>
    %c120_i32 = arith.constant 120 : i32
    %10 = vector.broadcast %c120_i32 : i32 to vector<64x1xi32>
    %11 = arith.addi %9, %10 : vector<64x1xi32>
    %12 = vector.broadcast %11 : vector<64x1xi32> to vector<64x128xi32>
    %13 = arith.cmpi eq, %3, %12 : vector<64x128xi32>
    %14 = arith.ori %8, %13 : vector<64x128xi1>
    %15 = vector.extract_strided_slice %0 {offsets = [0, 2], sizes = [64, 1], strides = [1, 1]} : vector<64x9xi32> to vector<64x1xi32>
    %c125_i32 = arith.constant 125 : i32
    %16 = vector.broadcast %c125_i32 : i32 to vector<64x1xi32>
    %17 = arith.addi %15, %16 : vector<64x1xi32>
    %18 = vector.broadcast %17 : vector<64x1xi32> to vector<64x128xi32>
    %19 = arith.cmpi eq, %3, %18 : vector<64x128xi32>
    %20 = arith.ori %14, %19 : vector<64x128xi1>
    %21 = arith.extui %20 : vector<64x128xi1> to vector<64x128xi32>
    %22 = arith.sitofp %21 : vector<64x128xi32> to vector<64x128xf32>
    %23 = arith.truncf %22 : vector<64x128xf32> to vector<64x128xbf16>
    %24 = tpu.iota {dimensions = array<i32: 1>} : vector<64x128xi32>
    %c128_i32 = arith.constant 128 : i32
    %25 = vector.broadcast %c128_i32 : i32 to vector<64x128xi32>
    %26 = arith.addi %24, %25 : vector<64x128xi32>
    %27 = vector.extract_strided_slice %0 {offsets = [0, 2], sizes = [64, 1], strides = [1, 1]} : vector<64x9xi32> to vector<64x1xi32>
    %c125_i32_2 = arith.constant 125 : i32
    %28 = vector.broadcast %c125_i32_2 : i32 to vector<64x1xi32>
    %29 = arith.addi %27, %28 : vector<64x1xi32>
    %30 = vector.broadcast %29 : vector<64x1xi32> to vector<64x128xi32>
    %31 = arith.cmpi eq, %26, %30 : vector<64x128xi32>
    %32 = vector.extract_strided_slice %0 {offsets = [0, 3], sizes = [64, 1], strides = [1, 1]} : vector<64x9xi32> to vector<64x1xi32>
    %c138_i32 = arith.constant 138 : i32
    %33 = vector.broadcast %c138_i32 : i32 to vector<64x1xi32>
    %34 = arith.addi %32, %33 : vector<64x1xi32>
    %35 = vector.broadcast %34 : vector<64x1xi32> to vector<64x128xi32>
    %36 = arith.cmpi eq, %26, %35 : vector<64x128xi32>
    %37 = arith.ori %31, %36 : vector<64x128xi1>
    %38 = vector.extract_strided_slice %0 {offsets = [0, 4], sizes = [64, 1], strides = [1, 1]} : vector<64x9xi32> to vector<64x1xi32>
    %c151_i32 = arith.constant 151 : i32
    %39 = vector.broadcast %c151_i32 : i32 to vector<64x1xi32>
    %40 = arith.addi %38, %39 : vector<64x1xi32>
    %41 = vector.broadcast %40 : vector<64x1xi32> to vector<64x128xi32>
    %42 = arith.cmpi eq, %26, %41 : vector<64x128xi32>
    %43 = arith.ori %37, %42 : vector<64x128xi1>
    %44 = vector.extract_strided_slice %0 {offsets = [0, 5], sizes = [64, 1], strides = [1, 1]} : vector<64x9xi32> to vector<64x1xi32>
    %c162_i32 = arith.constant 162 : i32
    %45 = vector.broadcast %c162_i32 : i32 to vector<64x1xi32>
    %46 = arith.addi %44, %45 : vector<64x1xi32>
    %47 = vector.broadcast %46 : vector<64x1xi32> to vector<64x128xi32>
    %48 = arith.cmpi eq, %26, %47 : vector<64x128xi32>
    %49 = arith.ori %43, %48 : vector<64x128xi1>
    %50 = vector.extract_strided_slice %0 {offsets = [0, 6], sizes = [64, 1], strides = [1, 1]} : vector<64x9xi32> to vector<64x1xi32>
    %c169_i32 = arith.constant 169 : i32
    %51 = vector.broadcast %c169_i32 : i32 to vector<64x1xi32>
    %52 = arith.addi %50, %51 : vector<64x1xi32>
    %53 = vector.broadcast %52 : vector<64x1xi32> to vector<64x128xi32>
    %54 = arith.cmpi eq, %26, %53 : vector<64x128xi32>
    %55 = arith.ori %49, %54 : vector<64x128xi1>
    %56 = vector.extract_strided_slice %0 {offsets = [0, 7], sizes = [64, 1], strides = [1, 1]} : vector<64x9xi32> to vector<64x1xi32>
    %c176_i32 = arith.constant 176 : i32
    %57 = vector.broadcast %c176_i32 : i32 to vector<64x1xi32>
    %58 = arith.addi %56, %57 : vector<64x1xi32>
    %59 = vector.broadcast %58 : vector<64x1xi32> to vector<64x128xi32>
    %60 = arith.cmpi eq, %26, %59 : vector<64x128xi32>
    %61 = arith.ori %55, %60 : vector<64x128xi1>
    %62 = vector.extract_strided_slice %0 {offsets = [0, 8], sizes = [64, 1], strides = [1, 1]} : vector<64x9xi32> to vector<64x1xi32>
    %c179_i32 = arith.constant 179 : i32
    %63 = vector.broadcast %c179_i32 : i32 to vector<64x1xi32>
    %64 = arith.addi %62, %63 : vector<64x1xi32>
    %65 = vector.broadcast %64 : vector<64x1xi32> to vector<64x128xi32>
    %66 = arith.cmpi eq, %26, %65 : vector<64x128xi32>
    %67 = arith.ori %61, %66 : vector<64x128xi1>
    %68 = arith.extui %67 : vector<64x128xi1> to vector<64x128xi32>
    %69 = arith.sitofp %68 : vector<64x128xi32> to vector<64x128xf32>
    %70 = arith.truncf %69 : vector<64x128xf32> to vector<64x128xbf16>
    %71 = tpu.concatenate %23, %70 in 1 : vector<64x128xbf16>, vector<64x128xbf16> -> vector<64x256xbf16>
    %c0_3 = arith.constant 0 : index
    %c0_4 = arith.constant 0 : index
    %72 = vector.load %arg2[%c0_3, %c0_4] : memref<256x128xbf16, #tpu.memory_space<vmem>>, vector<256x128xbf16>
    %cst = arith.constant dense<0.000000e+00> : vector<64x128xf32>
    %73 = tpu.matmul %71, %72, %cst {dimension_numbers = #tpu.dot_dimension_numbers<[1], [0], [0], [1], [0, 0, 1, 1], [], []>} : vector<64x256xbf16>, vector<256x128xbf16>, vector<64x128xf32> -> vector<64x128xf32>
    %c0_5 = arith.constant 0 : index
    %c0_6 = arith.constant 0 : index
    %74 = vector.load %arg3[%c0_5, %c0_6] : memref<256x128xbf16, #tpu.memory_space<vmem>>, vector<256x128xbf16>
    %cst_7 = arith.constant dense<0.000000e+00> : vector<64x128xf32>
    %75 = tpu.matmul %71, %74, %cst_7 {dimension_numbers = #tpu.dot_dimension_numbers<[1], [0], [0], [1], [0, 0, 1, 1], [], []>} : vector<64x256xbf16>, vector<256x128xbf16>, vector<64x128xf32> -> vector<64x128xf32>
    %76 = arith.addf %73, %75 : vector<64x128xf32>
    %c0_8 = arith.constant 0 : index
    %c0_9 = arith.constant 0 : index
    %77 = vector.load %arg4[%c0_8, %c0_9] : memref<64x128xf32, #tpu.memory_space<vmem>>, vector<64x128xf32>
    tpu.vector_store %arg4[%c0_8, %c0_9], %76 {strides = array<i32>} : memref<64x128xf32, #tpu.memory_space<vmem>>, vector<64x128xf32>,
    return
  }
  func.func @transform_0(%arg0: i32) -> (i32, i32) {
    %c0_i32 = arith.constant 0 : i32
    %c0_i32_0 = arith.constant 0 : i32
    return %arg0, %c0_i32 : i32, i32
  }
  func.func @transform_1(%arg0: i32) -> (i32, i32) {
    %c0_i32 = arith.constant 0 : i32
    %c0_i32_0 = arith.constant 0 : i32
    %c0_i32_1 = arith.constant 0 : i32
    return %c0_i32, %c0_i32_0 : i32, i32
  }
  func.func @transform_2(%arg0: i32) -> (i32, i32) {
    %c0_i32 = arith.constant 0 : i32
    %c0_i32_0 = arith.constant 0 : i32
    %c0_i32_1 = arith.constant 0 : i32
    return %c0_i32, %c0_i32_0 : i32, i32
  }
  func.func @transform_3(%arg0: i32) -> (i32, i32) {
    %c0_i32 = arith.constant 0 : i32
    %c0_i32_0 = arith.constant 0 : i32
    return %arg0, %c0_i32 : i32, i32
  }
}

</mosaic_0001>

<bundles_post_ra>
// kernel: tpu_custom_call.1
= control target key start
LH: loop header
LB: loop body
LE: loop exit
PB: predicated region body
PF: predicated region fallthrough
CT: control target
= control target key end

     0   :  { %8 = vsyncpa [#allocation3], 0  ;;  %s1704_s0 = inlined_call_operand.vmem [shape: s32[64,9], index: 0, kind: input, shape index: {}]   ;;  %s1705_s1 = inlined_call_operand.hbm [shape: bf16[256,128], index: 1, kind: input, shape index: {}]   ;;  %s1706_s2 = inlined_call_operand.hbm [shape: bf16[256,128], index: 2, kind: input, shape index: {}]   ;;  %s1707_s3 = inlined_call_operand.hbm [shape: f32[64,128], index: 3, kind: output, shape index: {}]  }
   0x1   :  { %9 = vsyncpa [#allocation6], 0 }
   0x2   :  { %10 = vsyncpa [#allocation4], 0  ;;  %s1241_s12 = smov [#allocation2]   ;;  %s1169_s16 = scalar_lea.hbm %s1705_s1, 2048 }
   0x3   :  { %s18_s13 = sshll.u32 %s1241_s12, 4  ;;  %p1170_p0 = scmp.ne.s32.totalorder %s1705_s1, %s1169_s16  ;;  %s19_s13 = int_to_ptr.vmem [resolvable:$true] %s18_s13 }
   0x4   :  { %p1173_p1 = scmp.lt.u32.totalorder %s1169_s16, %s1705_s1 }
   0x6   :  { %p1175_p2 = pnand %p1173_p1, %p1170_p0 }
   0x8   :  { %1178 = shalt.err (!%p1175_p2)
}
   0x9   :  { %s1179_s21 = scalar_lea.vmem %s19_s13, 2048  ;;  %p1184_p4 = scmp.lt.s32.totalorder %s19_s13, %s19_s13 }
   0xa   :  { %p1180_p3 = scmp.ne.s32.totalorder %s19_s13, %s1179_s21  ;;  %p1185_p5 = scmp.lt.s32.totalorder %s1179_s21, %s1179_s21 }
   0xc   :  { %p1186_p6 = por %p1185_p5, %p1184_p4 }
   0xe   :  { %p1187_p7 = pnand %p1186_p6, %p1180_p3 }
  0x10   :  { %1190 = shalt.err (!%p1187_p7)
}
  0x11   :  { %s1242_s22 = smov 64   ;;  %s1243_s23 = smov 4  }
  0x12   :  { %24 = dma.hbm_to_vmem [thread:$0]  %s1705_s1, 2048, %s19_s13, [#allocation3], %s1242_s22, %s1242_s22, %s1243_s23  }
  0x13   :  { %s1244_s26 = smov [#allocation5]   ;;  %s1191_s30 = scalar_lea.hbm %s1706_s2, 2048 }
  0x14   :  { %s30_s27 = sshll.u32 %s1244_s26, 4  ;;  %p1192_p8 = scmp.ne.s32.totalorder %s1706_s2, %s1191_s30  ;;  %s31_s27 = int_to_ptr.vmem [resolvable:$true] %s30_s27 }
  0x15   :  { %p1195_p9 = scmp.lt.u32.totalorder %s1191_s30, %s1706_s2 }
  0x17   :  { %p1197_p10 = pnand %p1195_p9, %p1192_p8 }
  0x19   :  { %1200 = shalt.err (!%p1197_p10)
}
  0x1a   :  { %s1201_s8 = scalar_lea.vmem %s31_s27, 2048  ;;  %p1206_p12 = scmp.lt.s32.totalorder %s31_s27, %s31_s27 }
  0x1b   :  { %p1202_p11 = scmp.ne.s32.totalorder %s31_s27, %s1201_s8  ;;  %p1207_p13 = scmp.lt.s32.totalorder %s1201_s8, %s1201_s8 }
  0x1d   :  { %p1208_p0 = por %p1207_p13, %p1206_p12 }
  0x1f   :  { %p1209_p1 = pnand %p1208_p0, %p1202_p11 }
  0x21   :  { %1212 = shalt.err (!%p1209_p1)
}
  0x22   :  { %36 = dma.hbm_to_vmem [thread:$0]  %s1706_s2, 2048, %s31_s27, [#allocation6], %s1242_s22, %s1242_s22, %s1243_s23  }
  0x23   :  { %1235 = dma.done.wait [#allocation3], 2048  }
  0x24   :  { %1236 = vsyncadd [#allocation3], 4294965248 }
  0x25   :  { %1237 = dma.done.wait [#allocation6], 2048  }
  0x26   :  { %1238 = vsyncadd [#allocation6], 4294965248  ;;  %v1245_v0 = vmov 8   ;;  %v1246_v1 = vmov 3   ;;  %v1308_v2 = vld [vmem:[%s1704_s0 + $0x8] sm:$0xff]  ;;  %v1313_v3 = vld [vmem:[%s1704_s0] sm:$0xff] }
  0x27   :  { %1100 = vset.pattern.permute.xlu0 %v1245_v0  ;;  %1093 = vset.pattern.permute.xlu1 %v1246_v1  ;;  %v1318_v4 = vld [vmem:[%s1704_s0 + $0x18] sm:$0xff]  ;;  %v452_v5 = vadd.s32 179, %v1308_v2  ;;  %v211_v6 = vadd.s32 138, %v1313_v3  ;;  %v212_v8 = vadd.s32 138, %v1308_v2  ;;  %v260_v9 = vadd.s32 151, %v1308_v2  ;;  %v1329_v11 = vld [vmem:[%s1704_s0 + $0x10] sm:$0xff] }
  0x28   :  { %v454_v7 = vadd.s32 179, %v1318_v4  ;;  %v86_v10 = vadd.s32 120, %v1313_v3  ;;  %v1334_v12 = vld [vmem:[%s1704_s0 + $0x20] sm:$0xff]  ;;  %v1247_v13 = vmov 1   ;;  %v1248_v14 = vmov 4   ;;  %v1353_v27 = vld [vmem:[%s1704_s0 + $0x28] sm:$0xff] }
  0x29   :  { %463 = vperm.xlu0 %1100, %v452_v5   ;;  %220 = vperm.xlu1 %1093, %v211_v6   ;;  %v88_v15 = vadd.s32 120, %v1329_v11  ;;  %v307_v16 = vadd.s32 162, %v1313_v3  ;;  %v90_v17 = vadd.s32 120, %v1334_v12  ;;  %v355_v18 = vadd.s32 169, %v1313_v3  ;;  %v1361_v31 = vld [vmem:[%s1704_s0 + $0x38] sm:$0xff]  ;;  %v1378_v39 = vld [vmem:[%s1704_s0 + $0x30] sm:$0xff] }
  0x2a   :  { %v134_v19 = vadd.s32 125, %v1313_v3  ;;  %v1249_v20 = vmov 5   ;;  %v356_v21 = vadd.s32 169, %v1308_v2  ;;  %v135_v22 = vadd.s32 125, %v1308_v2  ;;  %v1137_v40 = vld [vmem:[#allocation5 + $0x40] sm:$0xff]   ;;  %v1141_v46 = vld [vmem:[#allocation5 + $0x48] sm:$0xff]  }
  0x2b   :  { %v404_v23 = vadd.s32 176, %v1308_v2  ;;  %v137_v24 = vadd.s32 125, %v1318_v4  ;;  %v1250_v25 = vmov 6   ;;  %v1251_v26 = vmov 2   ;;  %v1138_v41 = vld [vmem:[#allocation2 + $0x40] sm:$0xff]   ;;  %995 = vmatprep.subr.bf16.mxu0 %v1137_v40  ;;  %v1142_v47 = vld [vmem:[#allocation2 + $0x48] sm:$0xff]  }
  0x2c   :  { %v1252_v28 = vmov 7   ;;  %v451_v29 = vadd.s32 179, %v1313_v3  ;;  %v139_v30 = vadd.s32 125, %v1353_v27  ;;  %v141_v32 = vadd.s32 125, %v1361_v31  ;;  %v1139_v43 = vld [vmem:[#allocation5] sm:$0xff]   ;;  %1035 = vmatprep.subr.bf16.mxu1 %v1138_v41  ;;  %v1143_v48 = vld [vmem:[#allocation5 + $0x8] sm:$0xff]  }
  0x2d   :  { %469 = vperm.xlu0 %1100, %v454_v7   ;;  %223 = vperm.xlu1 %1093, %v212_v8   ;;  %v1253_v33 = vmov 0   ;;  %v259_v34 = vadd.s32 151, %v1313_v3  ;;  %v87_v35 = vadd.s32 120, %v1308_v2  ;;  %v261_v36 = vadd.s32 151, %v1329_v11  ;;  %v1140_v44 = vld [vmem:[#allocation2] sm:$0xff]   ;;  %v1144_v49 = vld [vmem:[#allocation2 + $0x8] sm:$0xff]  }
  0x2e   :  { %v263_v37 = vadd.s32 151, %v1334_v12  ;;  %v136_v38 = vadd.s32 125, %v1329_v11  ;;  %v265_v42 = vadd.s32 151, %v1378_v39  ;;  %v213_v45 = vadd.s32 138, %v1329_v11  ;;  %996 = vmatpush3.bf16.msra.mxu0 %v1139_v43  ;;  %1036 = vmatpush3.bf16.msra.mxu1 %v1140_v44  ;;  %v1145_v52 = vld [vmem:[#allocation5 + $0x50] sm:$0xff]   ;;  %v1149_v59 = vld [vmem:[#allocation5 + $0x58] sm:$0xff]  }
  0x2f   :  { %v308_v50 = vadd.s32 162, %v1308_v2  ;;  %997 = vmatprep.subr.bf16.mxu0 %v1141_v46  ;;  %v214_v51 = vadd.s32 138, %v1318_v4  ;;  %1037 = vmatprep.subr.bf16.mxu1 %v1142_v47  ;;  %v1146_v53 = vld [vmem:[#allocation2 + $0x50] sm:$0xff]   ;;  %v310_v54 = vadd.s32 162, %v1318_v4  ;;  %v262_v57 = vadd.s32 151, %v1318_v4  ;;  %v1150_v60 = vld [vmem:[#allocation2 + $0x58] sm:$0xff]  }
  0x30   :  { %v1147_v55 = vld [vmem:[#allocation5 + $0x10] sm:$0xff]   ;;  %v312_v58 = vadd.s32 162, %v1353_v27  ;;  %v1151_v61 = vld [vmem:[#allocation5 + $0x18] sm:$0xff]   ;;  %v309_v63 = vadd.s32 162, %v1329_v11  ;;  %v1154_v5 = vld [vmem:[#allocation2 + $0x60] sm:$0xff]   ;;  %v314_v6 = vadd.s32 162, %v1361_v31 }
  0x31   :  { %1109 = vset.pattern.permute.xlu0 %v1247_v13  ;;  %1094 = vset.pattern.permute.xlu1 %v1248_v14  ;;  %v1148_v56 = vld [vmem:[#allocation2 + $0x10] sm:$0xff]   ;;  %v1152_v62 = vld [vmem:[#allocation2 + $0x18] sm:$0xff]   ;;  %v1155_v7 = vld [vmem:[#allocation5 + $0x20] sm:$0xff]   ;;  %v456_v40 = vadd.s32 179, %v1353_v27  ;;  %v458_v41 = vadd.s32 179, %v1361_v31  ;;  %v89_v43 = vadd.s32 120, %v1318_v4 }
  0x32   :  { %271 = vperm.xlu1 %1094, %v260_v9   ;;  %95 = vperm.xlu0 %1109, %v86_v10   ;;  %v1156_v8 = vld [vmem:[#allocation2 + $0x20] sm:$0xff]   ;;  %v357_v9 = vadd.s32 169, %v1329_v11  ;;  %v1157_v10 = vld [vmem:[#allocation5 + $0x68] sm:$0xff]   ;;  %v138_v44 = vadd.s32 125, %v1334_v12  ;;  %v311_v46 = vadd.s32 162, %v1334_v12  ;;  %s1256_s0 = smov [#allocation7]  }
  0x33   :  { %998 = vmatpush3.bf16.msra.mxu0 %v1143_v48  ;;  %1038 = vmatpush3.bf16.msra.mxu1 %v1144_v49  ;;  %v359_v49 = vadd.s32 169, %v1334_v12  ;;  %s918_s25 = sshll.u32 %s1256_s0, 4  ;;  %s919_s25 = int_to_ptr.vmem [resolvable:$true] %s918_s25 }
  0x34   :  { %999 = vmatprep.subr.bf16.mxu0 %v1145_v52  ;;  %1039 = vmatprep.subr.bf16.mxu1 %v1146_v53  ;;  %v360_v52 = vadd.s32 169, %v1353_v27  ;;  %s1213_s26 = scalar_lea.vmem %s919_s25, 1024  ;;  %p1218_p3 = scmp.lt.s32.totalorder %s919_s25, %s919_s25 }
  0x35   :  { %p1214_p2 = scmp.ne.s32.totalorder %s919_s25, %s1213_s26  ;;  %p1219_p4 = scmp.lt.s32.totalorder %s1213_s26, %s1213_s26 }
  0x36   :  { %1095 = vset.pattern.permute.xlu1 %v1249_v20  ;;  %101 = vperm.xlu0 %1109, %v88_v15   ;;  %v1158_v15 = vld [vmem:[#allocation2 + $0x68] sm:$0xff]  }
  0x37   :  { %316 = vperm.xlu1 %1095, %v307_v16   ;;  %1000 = vmatpush3.bf16.msra.mxu0 %v1147_v55  ;;  %v1159_v16 = vld [vmem:[#allocation5 + $0x28] sm:$0xff]   ;;  %v408_v55 = vadd.s32 176, %v1353_v27  ;;  %p1220_p5 = por %p1219_p4, %p1218_p3 }
  0x38   :  { %1040 = vmatpush3.bf16.msra.mxu1 %v1148_v56  ;;  %1001 = vmatprep.subr.bf16.mxu0 %v1149_v59 }
  0x39   :  { %1041 = vmatprep.subr.bf16.mxu1 %v1150_v60  ;;  %p1221_p6 = pnand %p1220_p5, %p1214_p2 }
  0x3a   :  { %107 = vperm.xlu0 %1109, %v90_v17   ;;  %v403_v17 = vadd.s32 176, %v1313_v3 }
  0x3b   :  { %1096 = vset.pattern.permute.xlu1 %v1250_v25  ;;  %1002 = vmatpush3.bf16.msra.mxu0 %v1151_v61 }
  0x3c   :  { %364 = vperm.xlu1 %1096, %v355_v18   ;;  %1042 = vmatpush3.bf16.msra.mxu1 %v1152_v62  ;;  %v1160_v18 = vld [vmem:[#allocation2 + $0x28] sm:$0xff]  }
  0x3d   :  { %1043 = vmatprep.subr.bf16.mxu1 %v1154_v5 }
  0x3e   :  { %1120 = vset.pattern.permute.xlu0 %v1251_v26 }
  0x3f   :  { %143 = vperm.xlu0 %1120, %v134_v19   ;;  %v358_v19 = vadd.s32 169, %v1318_v4 }
  0x40   :  { %367 = vperm.xlu1 %1096, %v356_v21   ;;  %1044 = vmatpush3.bf16.msra.mxu1 %v1156_v8  ;;  %v1161_v21 = vld [vmem:[#allocation5 + $0x70] sm:$0xff]  }
  0x41   :  { %1045 = vmatprep.subr.bf16.mxu1 %v1158_v15  ;;  %v217_v15 = vadd.s32 138, %v1378_v39 }
  0x43   :  { %146 = vperm.xlu0 %1120, %v135_v22   ;;  %v1162_v22 = vld [vmem:[#allocation2 + $0x70] sm:$0xff]  }
  0x44   :  { %1097 = vset.pattern.permute.xlu1 %v1252_v28  ;;  %1046 = vmatpush3.bf16.msra.mxu1 %v1160_v18 }
  0x45   :  { %415 = vperm.xlu1 %1097, %v404_v23   ;;  %v405_v23 = vadd.s32 176, %v1329_v11  ;;  %1047 = vmatprep.subr.bf16.mxu1 %v1162_v22 }
  0x47   :  { %152 = vperm.xlu0 %1120, %v137_v24   ;;  %v1163_v24 = vld [vmem:[#allocation5 + $0x30] sm:$0xff]  }
  0x49   :  { %1098 = vset.pattern.permute.xlu1 %v1245_v0 }
  0x4a   :  { %460 = vperm.xlu1 %1098, %v451_v29   ;;  %v1164_v29 = vld [vmem:[#allocation2 + $0x30] sm:$0xff]  }
  0x4b   :  { %158 = vperm.xlu0 %1120, %v139_v30   ;;  %v1166_v30 = vld [vmem:[#allocation2 + $0x78] sm:$0xff]   ;;  %1048 = vmatpush3.bf16.msra.mxu1 %v1164_v29 }
  0x4c   :  { %1049 = vmatprep.subr.bf16.mxu1 %v1166_v30 }
  0x4e   :  { %1099 = vset.pattern.permute.xlu1 %v1253_v33 }
  0x4f   :  { %55 = vperm.xlu1 %1099, %v1313_v3   ;;  %164 = vperm.xlu0 %1120, %v141_v32   ;;  %v1165_v3 = vld [vmem:[#allocation5 + $0x78] sm:$0xff]   ;;  %v406_v32 = vadd.s32 176, %v1318_v4 }
  0x53   :  { %58 = vperm.xlu1 %1099, %v1308_v2   ;;  %1123 = vset.pattern.permute.xlu0 %v1248_v14  ;;  %v1153_v2 = vld [vmem:[#allocation5 + $0x60] sm:$0xff]  }
  0x54   :  { %268 = vperm.xlu0 %1123, %v259_v34   ;;  %1003 = vmatprep.subr.bf16.mxu0 %v1153_v2  ;;  %v407_v34 = vadd.s32 176, %v1334_v12 }
  0x55   :  { %1004 = vmatpush3.bf16.msra.mxu0 %v1155_v7 }
  0x56   :  { %1005 = vmatprep.subr.bf16.mxu0 %v1157_v10 }
  0x57   :  { %1101 = vset.pattern.permute.xlu1 %v1247_v13 }
  0x58   :  { %98 = vperm.xlu1 %1101, %v87_v35   ;;  %274 = vperm.xlu0 %1123, %v261_v36   ;;  %v1167_v35 = vld [vmem:[#allocation5 + $0x38] sm:$0xff]  }
  0x59   :  { %1006 = vmatpush3.bf16.msra.mxu0 %v1159_v16  ;;  %v1168_v36 = vld [vmem:[#allocation2 + $0x38] sm:$0xff]  }
  0x5a   :  { %1007 = vmatprep.subr.bf16.mxu0 %v1161_v21  ;;  %1050 = vmatpush3.bf16.msra.mxu1 %v1168_v36  ;;  %v266_v21 = vadd.s32 151, %v1361_v31 }
  0x5c   :  { %1102 = vset.pattern.permute.xlu1 %v1251_v26  ;;  %280 = vperm.xlu0 %1123, %v263_v37   ;;  %v409_v37 = vadd.s32 176, %v1378_v39 }
  0x5d   :  { %149 = vperm.xlu1 %1102, %v136_v38   ;;  %1008 = vmatpush3.bf16.msra.mxu0 %v1163_v24  ;;  %v453_v38 = vadd.s32 179, %v1329_v11 }
  0x5e   :  { %1009 = vmatprep.subr.bf16.mxu0 %v1165_v3 }
  0x60   :  { %286 = vperm.xlu0 %1123, %v265_v42   ;;  %v92_v42 = vadd.s32 120, %v1378_v39 }
  0x61   :  { %1103 = vset.pattern.permute.xlu1 %v1246_v1  ;;  %1010 = vmatpush3.bf16.msra.mxu0 %v1167_v35 }
  0x62   :  { %226 = vperm.xlu1 %1103, %v213_v45   ;;  %v264_v45 = vadd.s32 151, %v1353_v27 }
  0x64   :  { %1125 = vset.pattern.permute.xlu0 %v1249_v20 }
  0x65   :  { %319 = vperm.xlu0 %1125, %v308_v50  }
  0x66   :  { %229 = vperm.xlu1 %1103, %v214_v51  }
  0x69   :  { %325 = vperm.xlu0 %1125, %v310_v54  }
  0x6a   :  { %1104 = vset.pattern.permute.xlu1 %v1248_v14 }
  0x6b   :  { %277 = vperm.xlu1 %1104, %v262_v57  }
  0x6d   :  { %331 = vperm.xlu0 %1125, %v312_v58   ;;  %v455_v58 = vadd.s32 179, %v1334_v12 }
  0x6f   :  { %1105 = vset.pattern.permute.xlu1 %v1249_v20 }
  0x70   :  { %322 = vperm.xlu1 %1105, %v309_v63  }
  0x71   :  { %337 = vperm.xlu0 %1125, %v314_v6   ;;  %v91_v6 = vadd.s32 120, %v1353_v27 }
  0x74   :  { %1106 = vset.pattern.permute.xlu1 %v1250_v25 }
  0x75   :  { %370 = vperm.xlu1 %1106, %v357_v9   ;;  %1128 = vset.pattern.permute.xlu0 %v1252_v28  ;;  %v140_v9 = vadd.s32 125, %v1378_v39 }
  0x76   :  { %412 = vperm.xlu0 %1128, %v403_v17   ;;  %v218_v17 = vadd.s32 138, %v1361_v31 }
  0x79   :  { %373 = vperm.xlu1 %1106, %v358_v19  }
  0x7a   :  { %418 = vperm.xlu0 %1128, %v405_v23  }
  0x7d   :  { %1107 = vset.pattern.permute.xlu1 %v1252_v28 }
  0x7e   :  { %421 = vperm.xlu1 %1107, %v406_v32   ;;  %424 = vperm.xlu0 %1128, %v407_v34   ;;  %v361_v32 = vadd.s32 169, %v1378_v39 }
  0x82   :  { %1108 = vset.pattern.permute.xlu1 %v1245_v0  ;;  %430 = vperm.xlu0 %1128, %v409_v37   ;;  %v410_v37 = vadd.s32 176, %v1361_v31 }
  0x83   :  { %466 = vperm.xlu1 %1108, %v453_v38  }
  0x86   :  { %1130 = vset.pattern.permute.xlu0 %v1245_v0 }
  0x87   :  { %1110 = vset.pattern.permute.xlu1 %v1253_v33  ;;  %475 = vperm.xlu0 %1130, %v456_v40  }
  0x88   :  { %61 = vperm.xlu1 %1110, %v1329_v11   ;;  %v215_v11 = vadd.s32 138, %v1334_v12 }
  0x8b   :  { %481 = vperm.xlu0 %1130, %v458_v41  }
  0x8c   :  { %64 = vperm.xlu1 %1110, %v1318_v4   ;;  %v216_v4 = vadd.s32 138, %v1353_v27 }
  0x8f   :  { %1134 = vset.pattern.permute.xlu0 %v1247_v13 }
  0x90   :  { %1111 = vset.pattern.permute.xlu1 %v1247_v13  ;;  %113 = vperm.xlu0 %1134, %v92_v42   ;;  %v457_v42 = vadd.s32 179, %v1378_v39 }
  0x91   :  { %104 = vperm.xlu1 %1111, %v89_v43  }
  0x94   :  { %1136 = vset.pattern.permute.xlu0 %v1245_v0 }
  0x95   :  { %1112 = vset.pattern.permute.xlu1 %v1251_v26 }
  0x96   :  { %155 = vperm.xlu1 %1112, %v138_v44  }
  0x9a   :  { %1113 = vset.pattern.permute.xlu1 %v1246_v1 }
  0x9b   :  { %232 = vperm.xlu1 %1113, %v215_v11  }
  0x9f   :  { %235 = vperm.xlu1 %1113, %v216_v4  }
  0xa3   :  { %1114 = vset.pattern.permute.xlu1 %v1248_v14 }
  0xa4   :  { %283 = vperm.xlu1 %1114, %v264_v45  }
  0xa8   :  { %1115 = vset.pattern.permute.xlu1 %v1249_v20  ;;  %v1426_v47 = vpop.permute.xlu1 %220  ;;  %v1428_v48 = vpop.permute.xlu0 %463 }
  0xa9   :  { %328 = vperm.xlu1 %1115, %v311_v46   ;;  %v1254_v46 = vmov 0.0  }
  0xac   :  { %v1431_v50 = vpop.permute.xlu1 %223  ;;  %v1433_v51 = vpop.permute.xlu0 %469 }
  0xad   :  { %1116 = vset.pattern.permute.xlu1 %v1250_v25 }
  0xae   :  { %376 = vperm.xlu1 %1116, %v359_v49  }
  0xb1   :  { %v1437_v53 = vpop.permute.xlu1 %271  ;;  %v1439_v54 = vpop.permute.xlu0 %95 }
  0xb2   :  { %379 = vperm.xlu1 %1116, %v360_v52   ;;  %v1255_v52 = vmov 1.0|1.0  }
  0xb5   :  { %v1442_v56 = vpop.permute.xlu0 %101 }
  0xb6   :  { %1117 = vset.pattern.permute.xlu1 %v1252_v28  ;;  %v1445_v57 = vpop.permute.xlu1 %316 }
  0xb7   :  { %427 = vperm.xlu1 %1117, %v408_v55  }
  0xb9   :  { %v1448_v59 = vpop.permute.xlu0 %107 }
  0xbb   :  { %1118 = vset.pattern.permute.xlu1 %v1245_v0  ;;  %v1451_v60 = vpop.permute.xlu1 %364 }
  0xbc   :  { %472 = vperm.xlu1 %1118, %v455_v58  }
  0xbe   :  { %v1453_v61 = vpop.permute.xlu0 %143 }
  0xbf   :  { %v1455_v62 = vpop.permute.xlu1 %367 }
  0xc0   :  { %1119 = vset.pattern.permute.xlu1 %v1253_v33 }
  0xc1   :  { %67 = vperm.xlu1 %1119, %v1334_v12  }
  0xc2   :  { %v1459_v63 = vpop.permute.xlu0 %146 }
  0xc4   :  { %v1461_v2 = vpop.permute.xlu1 %415 }
  0xc5   :  { %70 = vperm.xlu1 %1119, %v1353_v27  }
  0xc6   :  { %v1464_v5 = vpop.permute.xlu0 %152 }
  0xc9   :  { %1121 = vset.pattern.permute.xlu1 %v1247_v13  ;;  %v1468_v7 = vpop.permute.xlu1 %460 }
  0xca   :  { %110 = vperm.xlu1 %1121, %v91_v6   ;;  %v1470_v8 = vpop.permute.xlu0 %158 }
  0xce   :  { %1122 = vset.pattern.permute.xlu1 %v1251_v26  ;;  %v56_v12 = vpop.permute.xlu1 %55  ;;  %v1474_v10 = vpop.permute.xlu0 %164  ;;  %v52_v26 = vlaneseq }
  0xcf   :  { %161 = vperm.xlu1 %1122, %v140_v9  }
  0xd0   :  { %v1488_v24 = vand.u32 127, %v52_v26 }
  0xd2   :  { %v59_v16 = vpop.permute.xlu1 %58  ;;  %v1494_v30 = vadd.s32 128, %v1488_v24  ;;  %vm118_vm9 = vcmp.eq.s32.totalorder %v1488_v24, %v1439_v54  ;;  %vm78_vm10 = vcmp.eq.s32.totalorder %v1488_v24, %v56_v12 }
  0xd3   :  { %1124 = vset.pattern.permute.xlu1 %v1246_v1  ;;  %v269_v27 = vpop.permute.xlu0 %268  ;;  %v313_v1 = vadd.s32 162, %v1378_v39  ;;  %vm1521_vm15 = vmor %vm78_vm10, %vm118_vm9 }
  0xd4   :  { %238 = vperm.xlu1 %1124, %v217_v15   ;;  %vm204_vm0 = vcmp.eq.s32.totalorder %v1494_v30, %v1459_v63  ;;  %vm244_vm1 = vcmp.eq.s32.totalorder %v1494_v30, %v1431_v50  ;;  %vm203_vm2 = vcmp.eq.s32.totalorder %v1494_v30, %v1453_v61  ;;  %vm243_vm4 = vcmp.eq.s32.totalorder %v1494_v30, %v1426_v47 }
  0xd5   :  { %vm252_vm3 = vmor %vm204_vm0, %vm244_vm1  ;;  %vm291_vm5 = vcmp.eq.s32.totalorder %v1494_v30, %v269_v27  ;;  %vm292_vm6 = vcmp.eq.s32.totalorder %v1494_v30, %v1437_v53  ;;  %vm339_vm14 = vcmp.eq.s32.totalorder %v1494_v30, %v1445_v57  ;;  %vm166_vm1 = vcmp.eq.s32.totalorder %v1488_v24, %v1453_v61 }
  0xd6   :  { %vm251_vm7 = vmor %vm203_vm2, %vm243_vm4  ;;  %vm388_vm2 = vcmp.eq.s32.totalorder %v1494_v30, %v1455_v62  ;;  %vm79_vm4 = vcmp.eq.s32.totalorder %v1488_v24, %v59_v16  ;;  %vm436_vm9 = vcmp.eq.s32.totalorder %v1494_v30, %v1461_v2  ;;  %v93_v53 = vadd.s32 120, %v1361_v31 }
  0xd7   :  { %v99_v18 = vpop.permute.xlu1 %98  ;;  %v1479_v19 = vpop.permute.xlu0 %274  ;;  %vm300_vm11 = vmor %vm252_vm3, %vm292_vm6  ;;  %vm387_vm6 = vcmp.eq.s32.totalorder %v1494_v30, %v1451_v60 }
  0xd8   :  { %241 = vperm.xlu1 %1124, %v218_v17   ;;  %vm299_vm12 = vmor %vm251_vm7, %vm291_vm5  ;;  %vm119_vm0 = vcmp.eq.s32.totalorder %v1488_v24, %v99_v18  ;;  %vm167_vm7 = vcmp.eq.s32.totalorder %v1488_v24, %v1459_v63 }
  0xd9   :  { %vm347_vm3 = vmor %vm299_vm12, %vm339_vm14 }
  0xda   :  { %vm1543_vm10 = vmor %vm1521_vm15, %vm166_vm1 }
  0xdb   :  { %v1482_v22 = vpop.permute.xlu0 %280  ;;  %vm1548_vm12 = vmor %vm347_vm3, %vm387_vm6  ;;  %vm483_vm6 = vcmp.eq.s32.totalorder %v1494_v30, %v1468_v7 }
  0xdc   :  { %1126 = vset.pattern.permute.xlu1 %v1248_v14  ;;  %v1485_v23 = vpop.permute.xlu1 %149 }
  0xdd   :  { %289 = vperm.xlu1 %1126, %v266_v21   ;;  %vm205_vm15 = vcmp.eq.s32.totalorder %v1494_v30, %v1485_v23 }
  0xdf   :  { %v1490_v29 = vpop.permute.xlu0 %286 }
  0xe1   :  { %1127 = vset.pattern.permute.xlu1 %v1249_v20  ;;  %v227_v3 = vpop.permute.xlu1 %226  ;;  %v362_v20 = vadd.s32 169, %v1361_v31 }
  0xe2   :  { %334 = vperm.xlu1 %1127, %v313_v1  }
  0xe4   :  { %v320_v34 = vpop.permute.xlu0 %319 }
  0xe5   :  { %v230_v14 = vpop.permute.xlu1 %229  ;;  %vm340_vm8 = vcmp.eq.s32.totalorder %v1494_v30, %v320_v34 }
  0xe6   :  { %1129 = vset.pattern.permute.xlu1 %v1250_v25  ;;  %vm348_vm13 = vmor %vm300_vm11, %vm340_vm8  ;;  %vm245_vm11 = vcmp.eq.s32.totalorder %v1494_v30, %v227_v3  ;;  %vm246_vm3 = vcmp.eq.s32.totalorder %v1494_v30, %v230_v14 }
  0xe7   :  { %382 = vperm.xlu1 %1129, %v361_v32   ;;  %vm396_vm5 = vmor %vm348_vm13, %vm388_vm2  ;;  %vm484_vm13 = vcmp.eq.s32.totalorder %v1494_v30, %v1428_v48  ;;  %vm206_vm2 = vcmp.eq.s32.totalorder %v1494_v30, %v1464_v5 }
  0xe8   :  { %v1505_v35 = vpop.permute.xlu0 %325  ;;  %vm127_vm8 = vmor %vm79_vm4, %vm119_vm0 }
  0xe9   :  { %vm444_vm14 = vmor %vm396_vm5, %vm436_vm9 }
  0xea   :  { %v278_v25 = vpop.permute.xlu1 %277  ;;  %vm1554_vm0 = vmor %vm127_vm8, %vm167_vm7 }
  0xeb   :  { %385 = vperm.xlu1 %1129, %v362_v20   ;;  %vm1561_vm1 = vmor %vm205_vm15, %vm245_vm11  ;;  %vm294_vm7 = vcmp.eq.s32.totalorder %v1494_v30, %v278_v25  ;;  %vm293_vm11 = vcmp.eq.s32.totalorder %v1494_v30, %v1479_v19 }
  0xec   :  { %v1516_v36 = vpop.permute.xlu0 %331  ;;  %vm492_vm5 = vmor %vm444_vm14, %vm484_vm13  ;;  %vm342_vm13 = vcmp.eq.s32.totalorder %v1494_v30, %v1505_v35 }
  0xed   :  { %vm254_vm15 = vmor %vm206_vm2, %vm246_vm3  ;;  %v940_v48 = vsel %vm492_vm5, 1.0, %v1254_v46 }
  0xee   :  { %vm302_vm14 = vmor %vm254_vm15, %vm294_vm7 }
  0xef   :  { %1131 = vset.pattern.permute.xlu1 %v1252_v28  ;;  %v323_v40 = vpop.permute.xlu1 %322  ;;  %vm963_vm2 = vmpackc.low %vm1554_vm0, %vm1543_vm10 }
  0xf0   :  { %433 = vperm.xlu1 %1131, %v410_v37   ;;  %v1532_v41 = vpop.permute.xlu0 %337  ;;  %vm1589_vm3 = vmor %vm1561_vm1, %vm293_vm11 }
  0xf1   :  { %vm350_vm5 = vmor %vm302_vm14, %vm342_vm13 }
  0xf4   :  { %1132 = vset.pattern.permute.xlu1 %v1245_v0  ;;  %v371_v11 = vpop.permute.xlu1 %370 }
  0xf5   :  { %478 = vperm.xlu1 %1132, %v457_v42   ;;  %v413_v45 = vpop.permute.xlu0 %412  ;;  %vm389_vm10 = vcmp.eq.s32.totalorder %v1494_v30, %v371_v11 }
  0xf6   :  { %vm435_vm4 = vcmp.eq.s32.totalorder %v1494_v30, %v413_v45 }
  0xf7   :  { %vm443_vm8 = vmor %vm1548_vm12, %vm435_vm4  ;;  %vm341_vm4 = vcmp.eq.s32.totalorder %v1494_v30, %v323_v40 }
  0xf8   :  { %vm491_vm9 = vmor %vm443_vm8, %vm483_vm6  ;;  %v374_v0 = vpop.permute.xlu1 %373  ;;  %vm486_vm6 = vcmp.eq.s32.totalorder %v1494_v30, %v1433_v51 }
  0xf9   :  { %1133 = vset.pattern.permute.xlu1 %v1253_v33  ;;  %v939_v47 = vsel %vm491_vm9, 1.0, %v1254_v46  ;;  %vm390_vm12 = vcmp.eq.s32.totalorder %v1494_v30, %v374_v0  ;;  %vm349_vm8 = vmor %vm1589_vm3, %vm341_vm4 }
  0xfa   :  { %73 = vperm.xlu1 %1133, %v1378_v39   ;;  %v515_v49 = vpack.c.bf16 %v940_v48, %v939_v47  ;;  %v419_v39 = vpop.permute.xlu0 %418  ;;  %vm398_vm0 = vmor %vm350_vm5, %vm390_vm12  ;;  %vm169_vm5 = vcmp.eq.s32.totalorder %v1488_v24, %v1464_v5 }
  0xfb   :  { %vm437_vm9 = vcmp.eq.s32.totalorder %v1494_v30, %v419_v39  ;;  %vm397_vm11 = vmor %vm349_vm8, %vm389_vm10  ;;  %vm168_vm10 = vcmp.eq.s32.totalorder %v1488_v24, %v1485_v23 }
  0xfc   :  { %711 = vmatprep.mubr.bf16.mxu0 %v515_v49  ;;  %872 = vmatprep.mubr.bf16.mxu1 %v515_v49  ;;  %vm445_vm13 = vmor %vm397_vm11, %vm437_vm9  ;;  %vm208_vm11 = vcmp.eq.s32.totalorder %v1494_v30, %v1470_v8 }
  0xfd   :  { %v422_v50 = vpop.permute.xlu1 %421  ;;  %964 = vmatmul.mubr.msk.bf16.vlgmr.msra.gmra.mrb[0].mxu0 %vm963_vm2, %v1255_v52  ;;  %988 = vmatmul.mubr.msk.bf16.vlgmr.msra.gmra.mrb[0].mxu1 %vm963_vm2, %v1255_v52  ;;  %vm120_vm2 = vcmp.eq.s32.totalorder %v1488_v24, %v1442_v56 }
  0xfe   :  { %vm438_vm1 = vcmp.eq.s32.totalorder %v1494_v30, %v422_v50  ;;  %76 = vperm.xlu1 %1133, %v1361_v31   ;;  %v425_v5 = vpop.permute.xlu0 %424 }
  0xff   :  { %vm446_vm7 = vmor %vm398_vm0, %vm438_vm1 }
 0x100   :  { %vm494_vm15 = vmor %vm446_vm7, %vm486_vm6 }
 0x101   :  { %v942_v51 = vsel %vm494_vm15, 1.0, %v1254_v46 }
 0x102   :  { %1135 = vset.pattern.permute.xlu1 %v1247_v13  ;;  %v467_v54 = vpop.permute.xlu1 %466  ;;  %v1631_v7 = vpop.permute.xlu0 %430 }
 0x103   :  { %vm485_vm14 = vcmp.eq.s32.totalorder %v1494_v30, %v467_v54  ;;  %116 = vperm.xlu1 %1135, %v93_v53  }
 0x104   :  { %vm493_vm12 = vmor %vm445_vm13, %vm485_vm14  ;;  %vm344_vm13 = vcmp.eq.s32.totalorder %v1494_v30, %v1516_v36 }
 0x105   :  { %v941_v55 = vsel %vm493_vm12, 1.0, %v1254_v46 }
 0x106   :  { %v516_v31 = vpack.c.bf16 %v942_v51, %v941_v55  ;;  %v476_v12 = vpop.permute.xlu0 %475 }
 0x107   :  { %v62_v57 = vpop.permute.xlu1 %61 }
 0x108   :  { %719 = vmatprep.mubr.bf16.mxu0 %v516_v31  ;;  %880 = vmatprep.mubr.bf16.mxu1 %v516_v31  ;;  %vm80_vm3 = vcmp.eq.s32.totalorder %v1488_v24, %v62_v57 }
 0x109   :  { %vm128_vm4 = vmor %vm80_vm3, %vm120_vm2 }
 0x10a   :  { %vm176_vm0 = vmor %vm128_vm4, %vm168_vm10  ;;  %vm295_vm10 = vcmp.eq.s32.totalorder %v1494_v30, %v1482_v22  ;;  %v482_v14 = vpop.permute.xlu0 %481 }
 0x10b   :  { %v65_v13 = vpop.permute.xlu1 %64 }
 0x10c   :  { %vm81_vm1 = vcmp.eq.s32.totalorder %v1488_v24, %v65_v13 }
 0x10f   :  { %v114_v38 = vpop.permute.xlu0 %113 }
 0x110   :  { %v105_v58 = vpop.permute.xlu1 %104 }
 0x111   :  { %vm121_vm6 = vcmp.eq.s32.totalorder %v1488_v24, %v105_v58 }
 0x112   :  { %vm129_vm7 = vmor %vm81_vm1, %vm121_vm6 }
 0x113   :  { %vm177_vm8 = vmor %vm129_vm7, %vm169_vm5 }
 0x114   :  { %vm965_vm9 = vmpackc.low %vm177_vm8, %vm176_vm0 }
 0x115   :  { %v156_v56 = vpop.permute.xlu1 %155  ;;  %966 = vmatmul.mubr.msk.bf16.gmra.mrb[4].mxu0 %vm965_vm9, %v1255_v52  ;;  %990 = vmatmul.mubr.msk.bf16.gmra.mrb[4].mxu1 %vm965_vm9, %v1255_v52 }
 0x116   :  { %vm207_vm5 = vcmp.eq.s32.totalorder %v1494_v30, %v156_v56 }
 0x11a   :  { %v233_v60 = vpop.permute.xlu1 %232 }
 0x11b   :  { %vm247_vm4 = vcmp.eq.s32.totalorder %v1494_v30, %v233_v60 }
 0x11c   :  { %vm255_vm0 = vmor %vm207_vm5, %vm247_vm4 }
 0x11d   :  { %vm303_vm7 = vmor %vm255_vm0, %vm295_vm10 }
 0x11e   :  { %v236_v61 = vpop.permute.xlu1 %235 }
 0x11f   :  { %vm248_vm15 = vcmp.eq.s32.totalorder %v1494_v30, %v236_v61 }
 0x120   :  { %vm256_vm14 = vmor %vm208_vm11, %vm248_vm15 }
 0x123   :  { %v284_v62 = vpop.permute.xlu1 %283 }
 0x124   :  { %vm296_vm12 = vcmp.eq.s32.totalorder %v1494_v30, %v284_v62 }
 0x125   :  { %vm304_vm2 = vmor %vm256_vm14, %vm296_vm12  ;;  %vm488_vm14 = vcmp.eq.s32.totalorder %v1494_v30, %v476_v12 }
 0x126   :  { %vm1626_vm3 = vmor %vm304_vm2, %vm344_vm13  ;;  %vm439_vm2 = vcmp.eq.s32.totalorder %v1494_v30, %v425_v5 }
 0x128   :  { %v329_v2 = vpop.permute.xlu1 %328 }
 0x129   :  { %vm343_vm1 = vcmp.eq.s32.totalorder %v1494_v30, %v329_v2 }
 0x12a   :  { %vm351_vm8 = vmor %vm303_vm7, %vm343_vm1  ;;  %vm122_vm1 = vcmp.eq.s32.totalorder %v1488_v24, %v1448_v59  ;;  %vm170_vm7 = vcmp.eq.s32.totalorder %v1488_v24, %v156_v56 }
 0x12d   :  { %v377_v6 = vpop.permute.xlu1 %376 }
 0x12e   :  { %vm391_vm9 = vcmp.eq.s32.totalorder %v1494_v30, %v377_v6 }
 0x12f   :  { %vm399_vm12 = vmor %vm351_vm8, %vm391_vm9 }
 0x130   :  { %vm447_vm5 = vmor %vm399_vm12, %vm439_vm2 }
 0x131   :  { %v380_v9 = vpop.permute.xlu1 %379 }
 0x132   :  { %vm392_vm6 = vcmp.eq.s32.totalorder %v1494_v30, %v380_v9 }
 0x133   :  { %vm400_vm11 = vmor %vm1626_vm3, %vm392_vm6 }
 0x136   :  { %v428_v15 = vpop.permute.xlu1 %427 }
 0x137   :  { %vm440_vm15 = vcmp.eq.s32.totalorder %v1494_v30, %v428_v15 }
 0x138   :  { %vm448_vm13 = vmor %vm400_vm11, %vm440_vm15  ;;  %vm171_vm15 = vcmp.eq.s32.totalorder %v1488_v24, %v1470_v8 }
 0x139   :  { %vm496_vm4 = vmor %vm448_vm13, %vm488_vm14 }
 0x13a   :  { %v944_v27 = vsel %vm496_vm4, 1.0, %v1254_v46  ;;  %vm210_vm4 = vcmp.eq.s32.totalorder %v1494_v30, %v1474_v10 }
 0x13b   :  { %v473_v16 = vpop.permute.xlu1 %472 }
 0x13c   :  { %vm487_vm10 = vcmp.eq.s32.totalorder %v1494_v30, %v473_v16 }
 0x13d   :  { %vm495_vm0 = vmor %vm447_vm5, %vm487_vm10 }
 0x13e   :  { %v943_v17 = vsel %vm495_vm0, 1.0, %v1254_v46  ;;  %vm346_vm0 = vcmp.eq.s32.totalorder %v1494_v30, %v1532_v41 }
 0x13f   :  { %v517_v18 = vpack.c.bf16 %v944_v27, %v943_v17 }
 0x140   :  { %v68_v19 = vpop.permute.xlu1 %67 }
 0x141   :  { %727 = vmatprep.mubr.bf16.mxu0 %v517_v18  ;;  %888 = vmatprep.mubr.bf16.mxu1 %v517_v18  ;;  %vm82_vm3 = vcmp.eq.s32.totalorder %v1488_v24, %v68_v19 }
 0x142   :  { %vm130_vm6 = vmor %vm82_vm3, %vm122_vm1 }
 0x143   :  { %vm178_vm8 = vmor %vm130_vm6, %vm170_vm7 }
 0x144   :  { %v71_v21 = vpop.permute.xlu1 %70 }
 0x145   :  { %vm83_vm9 = vcmp.eq.s32.totalorder %v1488_v24, %v71_v21 }
 0x149   :  { %v111_v26 = vpop.permute.xlu1 %110 }
 0x14a   :  { %vm123_vm11 = vcmp.eq.s32.totalorder %v1488_v24, %v111_v26 }
 0x14b   :  { %vm131_vm13 = vmor %vm83_vm9, %vm123_vm11  ;;  %vm297_vm11 = vcmp.eq.s32.totalorder %v1494_v30, %v1490_v29 }
 0x14c   :  { %vm179_vm14 = vmor %vm131_vm13, %vm171_vm15 }
 0x14d   :  { %vm967_vm12 = vmpackc.low %vm179_vm14, %vm178_vm8 }
 0x14e   :  { %v162_v22 = vpop.permute.xlu1 %161  ;;  %968 = vmatmul.mubr.msk.bf16.gmra.mrb[8].mxu0 %vm967_vm12, %v1255_v52  ;;  %992 = vmatmul.mubr.msk.bf16.gmra.mrb[8].mxu1 %vm967_vm12, %v1255_v52 }
 0x14f   :  { %vm209_vm7 = vcmp.eq.s32.totalorder %v1494_v30, %v162_v22 }
 0x153   :  { %v239_v59 = vpop.permute.xlu1 %238 }
 0x154   :  { %vm249_vm6 = vcmp.eq.s32.totalorder %v1494_v30, %v239_v59 }
 0x155   :  { %vm257_vm8 = vmor %vm209_vm7, %vm249_vm6 }
 0x156   :  { %vm305_vm13 = vmor %vm257_vm8, %vm297_vm11  ;;  %vm124_vm11 = vcmp.eq.s32.totalorder %v1488_v24, %v114_v38 }
 0x157   :  { %v242_v23 = vpop.permute.xlu1 %241 }
 0x158   :  { %vm250_vm2 = vcmp.eq.s32.totalorder %v1494_v30, %v242_v23 }
 0x159   :  { %vm258_vm5 = vmor %vm210_vm4, %vm250_vm2 }
 0x15c   :  { %v290_v1 = vpop.permute.xlu1 %289 }
 0x15d   :  { %vm298_vm10 = vcmp.eq.s32.totalorder %v1494_v30, %v290_v1 }
 0x15e   :  { %vm306_vm3 = vmor %vm258_vm5, %vm298_vm10  ;;  %vm490_vm10 = vcmp.eq.s32.totalorder %v1494_v30, %v482_v14 }
 0x15f   :  { %vm1663_vm1 = vmor %vm306_vm3, %vm346_vm0  ;;  %vm441_vm0 = vcmp.eq.s32.totalorder %v1494_v30, %v1631_v7 }
 0x161   :  { %v335_v3 = vpop.permute.xlu1 %334 }
 0x162   :  { %vm345_vm9 = vcmp.eq.s32.totalorder %v1494_v30, %v335_v3 }
 0x163   :  { %vm353_vm14 = vmor %vm305_vm13, %vm345_vm9  ;;  %vm172_vm13 = vcmp.eq.s32.totalorder %v1488_v24, %v162_v22 }
 0x166   :  { %v383_v32 = vpop.permute.xlu1 %382 }
 0x167   :  { %vm393_vm12 = vcmp.eq.s32.totalorder %v1494_v30, %v383_v32 }
 0x168   :  { %vm401_vm3 = vmor %vm353_vm14, %vm393_vm12 }
 0x169   :  { %vm449_vm7 = vmor %vm401_vm3, %vm441_vm0 }
 0x16a   :  { %v386_v34 = vpop.permute.xlu1 %385 }
 0x16b   :  { %vm394_vm15 = vcmp.eq.s32.totalorder %v1494_v30, %v386_v34 }
 0x16c   :  { %vm402_vm2 = vmor %vm1663_vm1, %vm394_vm15 }
 0x16f   :  { %v434_v20 = vpop.permute.xlu1 %433 }
 0x170   :  { %vm442_vm4 = vcmp.eq.s32.totalorder %v1494_v30, %v434_v20 }
 0x171   :  { %vm450_vm5 = vmor %vm402_vm2, %vm442_vm4  ;;  %vm173_vm4 = vcmp.eq.s32.totalorder %v1488_v24, %v1474_v10 }
 0x172   :  { %vm498_vm6 = vmor %vm450_vm5, %vm490_vm10 }
 0x173   :  { %v946_v35 = vsel %vm498_vm6, 1.0, %v1254_v46 }
 0x174   :  { %v479_v29 = vpop.permute.xlu1 %478 }
 0x175   :  { %vm489_vm8 = vcmp.eq.s32.totalorder %v1494_v30, %v479_v29 }
 0x176   :  { %vm497_vm9 = vmor %vm449_vm7, %vm489_vm8 }
 0x177   :  { %v945_v25 = vsel %vm497_vm9, 1.0, %v1254_v46 }
 0x178   :  { %v518_v36 = vpack.c.bf16 %v946_v35, %v945_v25 }
 0x179   :  { %v74_v37 = vpop.permute.xlu1 %73 }
 0x17a   :  { %735 = vmatprep.mubr.bf16.mxu0 %v518_v36  ;;  %896 = vmatprep.mubr.bf16.mxu1 %v518_v36  ;;  %vm84_vm1 = vcmp.eq.s32.totalorder %v1488_v24, %v74_v37 }
 0x17b   :  { %vm132_vm15 = vmor %vm84_vm1, %vm124_vm11 }
 0x17c   :  { %vm180_vm14 = vmor %vm132_vm15, %vm172_vm13 }
 0x17d   :  { %v77_v40 = vpop.permute.xlu1 %76 }
 0x17e   :  { %vm85_vm12 = vcmp.eq.s32.totalorder %v1488_v24, %v77_v40 }
 0x182   :  { %v117_v41 = vpop.permute.xlu1 %116 }
 0x183   :  { %vm125_vm2 = vcmp.eq.s32.totalorder %v1488_v24, %v117_v41 }
 0x184   :  { %vm133_vm5 = vmor %vm85_vm12, %vm125_vm2 }
 0x185   :  { %vm181_vm10 = vmor %vm133_vm5, %vm173_vm4 }
 0x186   :  { %vm969_vm0 = vmpackc.low %vm181_vm10, %vm180_vm14 }
 0x187   :  { %970 = vmatmul.mubr.msk.bf16.gmra.mrb[12].mxu0 %vm969_vm0, %v1255_v52  ;;  %994 = vmatmul.mubr.msk.bf16.gmra.mrb[12].mxu1 %vm969_vm0, %v1255_v52 }
 0x1d0   :  { %v1011_v30 = vpop.f32.mrb[0].mxu0  ;;  %v1051_v42 = vpop.f32.mrb[0].mxu1 }
 0x1d1   :  { %v1012_v28 = vpop.f32.mrb[1].mxu0  ;;  %v1052_v43 = vpop.f32.mrb[1].mxu1 }
 0x1d2   :  { %v1013_v44 = vadd.f32 %v1012_v28, %v1011_v30  ;;  %v1053_v11 = vadd.f32 %v1052_v43, %v1051_v42  ;;  %v1014_v4 = vpop.f32.mrb[2].mxu0  ;;  %v1054_v45 = vpop.f32.mrb[2].mxu1 }
 0x1d3   :  { %v1015_v0 = vpop.f32.mrb[3].mxu0  ;;  %v1055_v46 = vpop.f32.mrb[3].mxu1 }
 0x1d4   :  { %v875_v47 = vadd.f32 %v1053_v11, %v1013_v44  ;;  %v1016_v48 = vadd.f32 %v1015_v0, %v1014_v4  ;;  %v1056_v10 = vadd.f32 %v1055_v46, %v1054_v45 }
 0x1d6   :  { %905 = vst [vmem:[#allocation7] sm:$0xff] %v875_v47  ;;  %v878_v24 = vadd.f32 %v1056_v10, %v1016_v48 }
 0x1d8   :  { %906 = vst [vmem:[#allocation7 + $0x8] sm:$0xff] %v878_v24 }
 0x1e8   :  { %v1017_v49 = vpop.f32.mrb[4].mxu0  ;;  %v1057_v33 = vpop.f32.mrb[4].mxu1 }
 0x1e9   :  { %v1018_v39 = vpop.f32.mrb[5].mxu0  ;;  %v1058_v50 = vpop.f32.mrb[5].mxu1 }
 0x1ea   :  { %v1019_v52 = vadd.f32 %v1018_v39, %v1017_v49  ;;  %v1059_v53 = vadd.f32 %v1058_v50, %v1057_v33  ;;  %v1020_v54 = vpop.f32.mrb[6].mxu0  ;;  %v1060_v51 = vpop.f32.mrb[6].mxu1 }
 0x1eb   :  { %v1021_v55 = vpop.f32.mrb[7].mxu0  ;;  %v1061_v31 = vpop.f32.mrb[7].mxu1 }
 0x1ec   :  { %v883_v57 = vadd.f32 %v1059_v53, %v1019_v52  ;;  %v1022_v13 = vadd.f32 %v1021_v55, %v1020_v54  ;;  %v1062_v58 = vadd.f32 %v1061_v31, %v1060_v51 }
 0x1ee   :  { %907 = vst [vmem:[#allocation7 + $0x10] sm:$0xff] %v883_v57  ;;  %v886_v56 = vadd.f32 %v1062_v58, %v1022_v13 }
 0x1f0   :  { %908 = vst [vmem:[#allocation7 + $0x18] sm:$0xff] %v886_v56 }
 0x221   :  { %v1023_v60 = vpop.f32.mrb[8].mxu0  ;;  %v1063_v61 = vpop.f32.mrb[8].mxu1 }
 0x222   :  { %v1024_v62 = vpop.f32.mrb[9].mxu0  ;;  %v1064_v63 = vpop.f32.mrb[9].mxu1 }
 0x223   :  { %v1025_v2 = vadd.f32 %v1024_v62, %v1023_v60  ;;  %v1065_v5 = vadd.f32 %v1064_v63, %v1063_v61  ;;  %v1026_v6 = vpop.f32.mrb[10].mxu0  ;;  %v1066_v7 = vpop.f32.mrb[10].mxu1 }
 0x224   :  { %v1027_v9 = vpop.f32.mrb[11].mxu0  ;;  %v1067_v12 = vpop.f32.mrb[11].mxu1 }
 0x225   :  { %v891_v15 = vadd.f32 %v1065_v5, %v1025_v2  ;;  %v1028_v16 = vadd.f32 %v1027_v9, %v1026_v6  ;;  %v1068_v27 = vadd.f32 %v1067_v12, %v1066_v7 }
 0x227   :  { %909 = vst [vmem:[#allocation7 + $0x20] sm:$0xff] %v891_v15  ;;  %v894_v17 = vadd.f32 %v1068_v27, %v1028_v16 }
 0x229   :  { %910 = vst [vmem:[#allocation7 + $0x28] sm:$0xff] %v894_v17 }
 0x25a   :  { %v1029_v18 = vpop.f32.mrb[12].mxu0  ;;  %v1069_v19 = vpop.f32.mrb[12].mxu1 }
 0x25b   :  { %v1030_v21 = vpop.f32.mrb[13].mxu0  ;;  %v1070_v26 = vpop.f32.mrb[13].mxu1 }
 0x25c   :  { %v1031_v22 = vadd.f32 %v1030_v21, %v1029_v18  ;;  %v1071_v59 = vadd.f32 %v1070_v26, %v1069_v19  ;;  %v1032_v23 = vpop.f32.mrb[14].mxu0  ;;  %v1072_v1 = vpop.f32.mrb[14].mxu1 }
 0x25d   :  { %v1033_v8 = vpop.f32.mrb[15].mxu0  ;;  %v1073_v3 = vpop.f32.mrb[15].mxu1 }
 0x25e   :  { %v899_v32 = vadd.f32 %v1071_v59, %v1031_v22  ;;  %v1034_v34 = vadd.f32 %v1033_v8, %v1032_v23  ;;  %v1074_v14 = vadd.f32 %v1073_v3, %v1072_v1 }
 0x260   :  { %911 = vst [vmem:[#allocation7 + $0x30] sm:$0xff] %v899_v32  ;;  %v902_v20 = vadd.f32 %v1074_v14, %v1034_v34 }
 0x262   :  { %912 = vst [vmem:[#allocation7 + $0x38] sm:$0xff] %v902_v20 }
 0x263   :  { %1224 = shalt.err (!%p1221_p6)
}
 0x264   :  { %s1225_s29 = scalar_lea.hbm %s1707_s3, 1024 }
 0x265   :  { %p1226_p7 = scmp.ne.s32.totalorder %s1707_s3, %s1225_s29  ;;  %p1229_p8 = scmp.lt.u32.totalorder %s1225_s29, %s1707_s3 }
 0x267   :  { %p1231_p9 = pnand %p1229_p8, %p1226_p7 }
 0x269   :  { %1234 = shalt.err (!%p1231_p9)
}
 0x26a   :  { %s1257_s7 = smov 128   ;;  %s1258_s8 = smov 8  }
 0x26b   :  { %924 = dma.vmem_to_hbm [thread:$0]  %s919_s25, 1024, %s1707_s3, [#allocation4], %s1257_s7, %s1257_s7, %s1258_s8  }
 0x26c   :  { %1239 = dma.done.wait [#allocation4], 1024  }
 0x26d   :  { %1240 = vsyncadd [#allocation4], 4294966272 }
 0x26e   :  { %928 = vsyncpa [#allocation3], 1 }
 0x26f   :  { %929 = vsyncpa [#allocation6], 1 }
 0x270   :  { %930 = vsyncpa [#allocation4], 1 }

</bundles_post_ra>
